<compile_context>
chip_gen: v7x
topology: tpu7x:2x2x1
jax: 0.10.0
libtpu: 0.0.40
codegen_flags: <defaults>
</compile_context>

<pallas_src>
import functools

import jax
import jax.numpy as jnp
from jax.experimental import pallas as pl
from jax.experimental.pallas import tpu as pltpu


def _lstm_head_kernel(x_ref, slab_ref, score_ref, *, seq_len, batch, hidden, embed):
    """Whole sequence in one invocation; time loop statically unrolled.

    slab_ref rows (lane width G = 4*hidden):
      [0     : E     ]  W_ih^T                                   (E, G)
      [E     : E+G   ]  W_hh^T, rows [H, G) zero (lane padding)  (G, G)
      [E+G   : E+G+1 ]  folded LSTM bias b_ih + b_hh             (1, G)
      [E+G+1 : E+G+2 ]  fused MLP head weight, lanes [H, G) zero (1, G)
      remaining rows    zero padding (sublane alignment)
    """
    T, Bk, H, E = seq_len, batch, hidden, embed
    G = 4 * H

    wih = slab_ref[0:E, :]                        # (E, G)
    whh = slab_ref[E:E + G, :]                    # (G, G)  row-padded recurrence weight
    bias = slab_ref[E + G:E + G + 1, :]           # (1, G)
    weff = slab_ref[E + G + 1:E + G + 2, :]       # (1, G)  fused head weight row

    # One-shot input projection (+ folded bias) for all timesteps, off the serial chain.
    xw = jnp.dot(x_ref[...], wih, preferred_element_type=jnp.float32) + bias   # (T*Bk, G)

    # h/c kept lane-padded to G lanes; real data in lanes [0, H).  Lanes [H, G) carry
    # bounded garbage that is zeroed by the padded W_hh rows and head-weight lanes.
    h = jnp.zeros((Bk, G), jnp.float32)
    c = jnp.zeros((Bk, G), jnp.float32)
    hs = []                                       # hidden states stay in vregs (no scratch)
    for t in range(T):                            # static unroll (T is small)
        gates = xw[t * Bk:(t + 1) * Bk, :] + jnp.dot(
            h, whh, preferred_element_type=jnp.float32)        # (Bk, G), all lanes valid
        # Full-width nonlinearities (EUP acts on whole vregs anyway), then XLU rolls align
        # the f/g/o lane groups with lanes [0, H).  PyTorch gate order: i | f | g | o.
        sig = jax.nn.sigmoid(gates)
        tng = jnp.tanh(gates)
        f_g = pltpu.roll(sig, 3 * H, 1)           # f: lanes [H,2H)  -> [0,H)
        g_g = pltpu.roll(tng, 2 * H, 1)           # g: lanes [2H,3H) -> [0,H)
        o_g = pltpu.roll(sig, H, 1)               # o: lanes [3H,4H) -> [0,H)
        c = f_g * c + sig * g_g                   # sig lanes [0,H) == input gate i
        h = o_g * jnp.tanh(c)
        hs.append(h)

    # Fused MLP head applied as one contraction over all stored hidden states; lane-dense
    # (1, T*Bk) output row -> single store.  weff lanes [H, G) are zero, so the padded-lane
    # garbage in hs contributes nothing.
    hs_all = jnp.concatenate(hs, axis=0)          # (T*Bk, G)
    scores = jax.lax.dot_general(
        weff, hs_all, (((1,), (1,)), ((), ())),
        preferred_element_type=jnp.float32)       # (1, T*Bk)
    score_ref[...] = scores.astype(score_ref.dtype)


@functools.partial(jax.jit, static_argnames=("use_mean",))
def baseline_classifier_forward(x, params, use_mean=False):
    """x: (T, B, E) float32.  Returns (T,) float32 scores in (0, 1)."""
    T, B, E = x.shape
    H = params["w_hh"].shape[1]
    G = 4 * H

    # ---- parameter preprocessing (XLA-side, once per call, outside the kernel) ----
    wih_t = params["w_ih"].T                                    # (E, G)
    whh_t = params["w_hh"].T                                    # (H, G)
    bias = (params["b_ih"] + params["b_hh"])[0]                 # (G,)   folded LSTM biases
    # Exact MLP fusion (no activation between the two Linears):
    #   s = h @ (w2 @ w1)^T + (b1 @ w2^T + b2)
    w_head = (params["w2"] @ params["w1"])[0]                   # (H,)
    b_eff = (params["b1"] @ params["w2"].T + params["b2"])[0, 0]  # scalar, added in wrapper

    rows = E + G + 2
    rows_pad = ((rows + 7) // 8) * 8                            # sublane-align the slab
    slab = jnp.zeros((rows_pad, G), jnp.float32)
    slab = slab.at[0:E, :].set(wih_t)
    slab = slab.at[E:E + H, :].set(whh_t)                       # rows [E+H, E+G) stay zero
    slab = slab.at[E + G, :].set(bias)
    slab = slab.at[E + G + 1, :H].set(w_head)                   # lanes [H, G) stay zero

    if use_mean:
        x_in = x                                                # all batch rows needed
    else:
        x_in = x[:, B - 1:B, :]                                 # only row B-1 feeds score[:, -1]
    Bk = x_in.shape[1]
    x2d = x_in.reshape(T * Bk, E)                               # (T*Bk, E), t-major / b-minor

    kernel = functools.partial(_lstm_head_kernel,
                               seq_len=T, batch=Bk, hidden=H, embed=E)

    score = pl.pallas_call(
        kernel,
        out_shape=jax.ShapeDtypeStruct((1, T * Bk), jnp.float32),
        grid_spec=pltpu.PrefetchScalarGridSpec(
            num_scalar_prefetch=0,
            grid=(1,),                                          # single invocation
            in_specs=[
                pl.BlockSpec((T * Bk, E), lambda i: (0, 0)),    # x (all timesteps)
                pl.BlockSpec((rows_pad, G), lambda i: (0, 0)),  # packed weight slab
            ],
            out_specs=pl.BlockSpec((1, T * Bk), lambda i: (0, 0)),
        ),
        compiler_params=pltpu.CompilerParams(
            dimension_semantics=("arbitrary",),
        ),
    )(x2d, slab)

    completion_score = score.reshape(T, Bk) + b_eff             # (T, Bk)
    if use_mean:
        return jax.nn.sigmoid(jnp.mean(completion_score, axis=1))
    return jax.nn.sigmoid(completion_score[:, -1])              # (T,)


def reference_forward(x, params, use_mean=False):
    """Pure-JAX reference of the same computation (sanity check)."""
    T, B, E = x.shape
    H = params["w_hh"].shape[1]

    def step(carry, x_t):
        h, c = carry
        gates = (x_t @ params["w_ih"].T + params["b_ih"][0]
                 + h @ params["w_hh"].T + params["b_hh"][0])
        i_g = jax.nn.sigmoid(gates[:, 0:H])
        f_g = jax.nn.sigmoid(gates[:, H:2 * H])
        g_g = jnp.tanh(gates[:, 2 * H:3 * H])
        o_g = jax.nn.sigmoid(gates[:, 3 * H:4 * H])
        c = f_g * c + i_g * g_g
        h = o_g * jnp.tanh(c)
        return (h, c), h

    h0 = jnp.zeros((B, H), jnp.float32)
    c0 = jnp.zeros((B, H), jnp.float32)
    (_, _), hs = jax.lax.scan(step, (h0, c0), x)                # hs: (T, B, H)

    z = hs @ params["w1"].T + params["b1"][0]
    s = z @ params["w2"].T + params["b2"][0]                    # (T, B, 1)
    completion_score = s[..., 0]                                # (T, B)
    if use_mean:
        return jax.nn.sigmoid(jnp.mean(completion_score, axis=1))
    return jax.nn.sigmoid(completion_score[:, -1])


def init_params(key, embed_dim=128, hidden_dim=32):
    """Deterministic synthetic parameters (shapes match nn.LSTM(E,H,1) + MLP(H,[H,1]))."""
    ks = jax.random.split(key, 8)
    H, E = hidden_dim, embed_dim
    scale = 1.0 / jnp.sqrt(jnp.float32(H))
    u = lambda k, shape: jax.random.uniform(k, shape, jnp.float32, -scale, scale)
    return {
        "w_ih": u(ks[0], (4 * H, E)),
        "w_hh": u(ks[1], (4 * H, H)),
        "b_ih": u(ks[2], (1, 4 * H)),
        "b_hh": u(ks[3], (1, 4 * H)),
        "w1":   u(ks[4], (H, H)),
        "b1":   u(ks[5], (1, H)),
        "w2":   u(ks[6], (1, H)),
        "b2":   u(ks[7], (1, 1)),
    }


if __name__ == "__main__":
    T, B, E, H = 8, 2, 128, 32   # seq=8, batch=2, embed_dim=128, hidden_dim=32

    key = jax.random.PRNGKey(0)
    k_x, k_p = jax.random.split(key)
    x = jax.random.normal(k_x, (T, B, E), jnp.float32)
    params = init_params(k_p, embed_dim=E, hidden_dim=H)

    # Default inference path (use_mean=False).
    out = baseline_classifier_forward(x, params, use_mean=False)
    out = jax.block_until_ready(out)
    ref = reference_forward(x, params, use_mean=False)
    assert out.shape == (T,)
    max_err = float(jnp.max(jnp.abs(out - ref)))
    assert max_err < 1e-2, f"use_mean=False mismatch vs reference: {max_err}"

    # use_mean=True path (full batch goes through the kernel).
    out_m = baseline_classifier_forward(x, params, use_mean=True)
    out_m = jax.block_until_ready(out_m)
    ref_m = reference_forward(x, params, use_mean=True)
    assert out_m.shape == (T,)
    max_err_m = float(jnp.max(jnp.abs(out_m - ref_m)))
    assert max_err_m < 1e-2, f"use_mean=True mismatch vs reference: {max_err_m}"

    print("KERNEL_OK")
</pallas_src>

<mosaic_0001>
module attributes {stable_mosaic.version = 11 : i64} {
  func.func @_lstm_head_kernel(%arg0: i32, %arg1: memref<8x128xf32, #tpu.memory_space<vmem>>, %arg2: memref<264x128xf32, #tpu.memory_space<vmem>>, %arg3: memref<1x8xf32, #tpu.memory_space<vmem>>) attributes {dimension_semantics = [#tpu.dimension_semantics<arbitrary>], iteration_bounds = array<i64: 1>, scalar_prefetch = 0 : i64, scratch_operands = 0 : i64, tpu.core_type = #tpu.core_type<tc>, window_params = [{pipeline_mode = #tpu.pipeline_mode<synchronous>, transform_indices = @transform_0, window_bounds = array<i64: 8, 128>}, {pipeline_mode = #tpu.pipeline_mode<synchronous>, transform_indices = @transform_1, window_bounds = array<i64: 264, 128>}, {pipeline_mode = #tpu.pipeline_mode<synchronous>, transform_indices = @transform_2, window_bounds = array<i64: 1, 8>}]} {
    %c0 = arith.constant 0 : index
    %c0_0 = arith.constant 0 : index
    %0 = vector.load %arg2[%c0, %c0_0] : memref<264x128xf32, #tpu.memory_space<vmem>>, vector<128x128xf32>
    %c128 = arith.constant 128 : index
    %c0_1 = arith.constant 0 : index
    %1 = vector.load %arg2[%c128, %c0_1] : memref<264x128xf32, #tpu.memory_space<vmem>>, vector<128x128xf32>
    %c256 = arith.constant 256 : index
    %c0_2 = arith.constant 0 : index
    %2 = vector.load %arg2[%c256, %c0_2] : memref<264x128xf32, #tpu.memory_space<vmem>>, vector<1x128xf32>
    %c257 = arith.constant 257 : index
    %c0_3 = arith.constant 0 : index
    %3 = vector.load %arg2[%c257, %c0_3] : memref<264x128xf32, #tpu.memory_space<vmem>>, vector<1x128xf32>
    %c0_4 = arith.constant 0 : index
    %c0_5 = arith.constant 0 : index
    %4 = vector.load %arg1[%c0_4, %c0_5] : memref<8x128xf32, #tpu.memory_space<vmem>>, vector<8x128xf32>
    %cst = arith.constant dense<0.000000e+00> : vector<8x128xf32>
    %5 = tpu.matmul %4, %0, %cst {dimension_numbers = #tpu.dot_dimension_numbers<[1], [0], [0], [1], [0, 0, 1, 1], [], []>} : vector<8x128xf32>, vector<128x128xf32>, vector<8x128xf32> -> vector<8x128xf32>
    %6 = vector.broadcast %2 : vector<1x128xf32> to vector<8x128xf32>
    %7 = arith.addf %5, %6 : vector<8x128xf32>
    %cst_6 = arith.constant 0.000000e+00 : f32
    %8 = vector.broadcast %cst_6 : f32 to vector<1x128xf32>
    %cst_7 = arith.constant 0.000000e+00 : f32
    %9 = vector.broadcast %cst_7 : f32 to vector<1x128xf32>
    %10 = vector.extract_strided_slice %7 {offsets = [0, 0], sizes = [1, 128], strides = [1, 1]} : vector<8x128xf32> to vector<1x128xf32>
    %cst_8 = arith.constant dense<0.000000e+00> : vector<1x128xf32>
    %11 = tpu.matmul %8, %1, %cst_8 {dimension_numbers = #tpu.dot_dimension_numbers<[1], [0], [0], [1], [0, 0, 1, 1], [], []>} : vector<1x128xf32>, vector<128x128xf32>, vector<1x128xf32> -> vector<1x128xf32>
    %12 = arith.addf %10, %11 : vector<1x128xf32>
    %13 = arith.negf %12 : vector<1x128xf32>
    %14 = math.exp %13 : vector<1x128xf32>
    %cst_9 = arith.constant 1.000000e+00 : f32
    %15 = vector.broadcast %cst_9 : f32 to vector<1x128xf32>
    %16 = arith.addf %15, %14 : vector<1x128xf32>
    %17 = arith.divf %15, %16 : vector<1x128xf32>
    %18 = math.tanh %12 : vector<1x128xf32>
    %c96_i32 = arith.constant 96 : i32
    %19 = tpu.dynamic_rotate %17 by %c96_i32 dim 1 : vector<1x128xf32>, i32 -> vector<1x128xf32>
    %c64_i32 = arith.constant 64 : i32
    %20 = tpu.dynamic_rotate %18 by %c64_i32 dim 1 : vector<1x128xf32>, i32 -> vector<1x128xf32>
    %c32_i32 = arith.constant 32 : i32
    %21 = tpu.dynamic_rotate %17 by %c32_i32 dim 1 : vector<1x128xf32>, i32 -> vector<1x128xf32>
    %22 = arith.mulf %19, %9 : vector<1x128xf32>
    %23 = arith.mulf %17, %20 : vector<1x128xf32>
    %24 = arith.addf %22, %23 : vector<1x128xf32>
    %25 = math.tanh %24 : vector<1x128xf32>
    %26 = arith.mulf %21, %25 : vector<1x128xf32>
    %27 = vector.extract_strided_slice %7 {offsets = [1, 0], sizes = [1, 128], strides = [1, 1]} : vector<8x128xf32> to vector<1x128xf32>
    %cst_10 = arith.constant dense<0.000000e+00> : vector<1x128xf32>
    %28 = tpu.matmul %26, %1, %cst_10 {dimension_numbers = #tpu.dot_dimension_numbers<[1], [0], [0], [1], [0, 0, 1, 1], [], []>} : vector<1x128xf32>, vector<128x128xf32>, vector<1x128xf32> -> vector<1x128xf32>
    %29 = arith.addf %27, %28 : vector<1x128xf32>
    %30 = arith.negf %29 : vector<1x128xf32>
    %31 = math.exp %30 : vector<1x128xf32>
    %cst_11 = arith.constant 1.000000e+00 : f32
    %32 = vector.broadcast %cst_11 : f32 to vector<1x128xf32>
    %33 = arith.addf %32, %31 : vector<1x128xf32>
    %34 = arith.divf %32, %33 : vector<1x128xf32>
    %35 = math.tanh %29 : vector<1x128xf32>
    %c96_i32_12 = arith.constant 96 : i32
    %36 = tpu.dynamic_rotate %34 by %c96_i32_12 dim 1 : vector<1x128xf32>, i32 -> vector<1x128xf32>
    %c64_i32_13 = arith.constant 64 : i32
    %37 = tpu.dynamic_rotate %35 by %c64_i32_13 dim 1 : vector<1x128xf32>, i32 -> vector<1x128xf32>
    %c32_i32_14 = arith.constant 32 : i32
    %38 = tpu.dynamic_rotate %34 by %c32_i32_14 dim 1 : vector<1x128xf32>, i32 -> vector<1x128xf32>
    %39 = arith.mulf %36, %24 : vector<1x128xf32>
    %40 = arith.mulf %34, %37 : vector<1x128xf32>
    %41 = arith.addf %39, %40 : vector<1x128xf32>
    %42 = math.tanh %41 : vector<1x128xf32>
    %43 = arith.mulf %38, %42 : vector<1x128xf32>
    %44 = vector.extract_strided_slice %7 {offsets = [2, 0], sizes = [1, 128], strides = [1, 1]} : vector<8x128xf32> to vector<1x128xf32>
    %cst_15 = arith.constant dense<0.000000e+00> : vector<1x128xf32>
    %45 = tpu.matmul %43, %1, %cst_15 {dimension_numbers = #tpu.dot_dimension_numbers<[1], [0], [0], [1], [0, 0, 1, 1], [], []>} : vector<1x128xf32>, vector<128x128xf32>, vector<1x128xf32> -> vector<1x128xf32>
    %46 = arith.addf %44, %45 : vector<1x128xf32>
    %47 = arith.negf %46 : vector<1x128xf32>
    %48 = math.exp %47 : vector<1x128xf32>
    %cst_16 = arith.constant 1.000000e+00 : f32
    %49 = vector.broadcast %cst_16 : f32 to vector<1x128xf32>
    %50 = arith.addf %49, %48 : vector<1x128xf32>
    %51 = arith.divf %49, %50 : vector<1x128xf32>
    %52 = math.tanh %46 : vector<1x128xf32>
    %c96_i32_17 = arith.constant 96 : i32
    %53 = tpu.dynamic_rotate %51 by %c96_i32_17 dim 1 : vector<1x128xf32>, i32 -> vector<1x128xf32>
    %c64_i32_18 = arith.constant 64 : i32
    %54 = tpu.dynamic_rotate %52 by %c64_i32_18 dim 1 : vector<1x128xf32>, i32 -> vector<1x128xf32>
    %c32_i32_19 = arith.constant 32 : i32
    %55 = tpu.dynamic_rotate %51 by %c32_i32_19 dim 1 : vector<1x128xf32>, i32 -> vector<1x128xf32>
    %56 = arith.mulf %53, %41 : vector<1x128xf32>
    %57 = arith.mulf %51, %54 : vector<1x128xf32>
    %58 = arith.addf %56, %57 : vector<1x128xf32>
    %59 = math.tanh %58 : vector<1x128xf32>
    %60 = arith.mulf %55, %59 : vector<1x128xf32>
    %61 = vector.extract_strided_slice %7 {offsets = [3, 0], sizes = [1, 128], strides = [1, 1]} : vector<8x128xf32> to vector<1x128xf32>
    %cst_20 = arith.constant dense<0.000000e+00> : vector<1x128xf32>
    %62 = tpu.matmul %60, %1, %cst_20 {dimension_numbers = #tpu.dot_dimension_numbers<[1], [0], [0], [1], [0, 0, 1, 1], [], []>} : vector<1x128xf32>, vector<128x128xf32>, vector<1x128xf32> -> vector<1x128xf32>
    %63 = arith.addf %61, %62 : vector<1x128xf32>
    %64 = arith.negf %63 : vector<1x128xf32>
    %65 = math.exp %64 : vector<1x128xf32>
    %cst_21 = arith.constant 1.000000e+00 : f32
    %66 = vector.broadcast %cst_21 : f32 to vector<1x128xf32>
    %67 = arith.addf %66, %65 : vector<1x128xf32>
    %68 = arith.divf %66, %67 : vector<1x128xf32>
    %69 = math.tanh %63 : vector<1x128xf32>
    %c96_i32_22 = arith.constant 96 : i32
    %70 = tpu.dynamic_rotate %68 by %c96_i32_22 dim 1 : vector<1x128xf32>, i32 -> vector<1x128xf32>
    %c64_i32_23 = arith.constant 64 : i32
    %71 = tpu.dynamic_rotate %69 by %c64_i32_23 dim 1 : vector<1x128xf32>, i32 -> vector<1x128xf32>
    %c32_i32_24 = arith.constant 32 : i32
    %72 = tpu.dynamic_rotate %68 by %c32_i32_24 dim 1 : vector<1x128xf32>, i32 -> vector<1x128xf32>
    %73 = arith.mulf %70, %58 : vector<1x128xf32>
    %74 = arith.mulf %68, %71 : vector<1x128xf32>
    %75 = arith.addf %73, %74 : vector<1x128xf32>
    %76 = math.tanh %75 : vector<1x128xf32>
    %77 = arith.mulf %72, %76 : vector<1x128xf32>
    %78 = vector.extract_strided_slice %7 {offsets = [4, 0], sizes = [1, 128], strides = [1, 1]} : vector<8x128xf32> to vector<1x128xf32>
    %cst_25 = arith.constant dense<0.000000e+00> : vector<1x128xf32>
    %79 = tpu.matmul %77, %1, %cst_25 {dimension_numbers = #tpu.dot_dimension_numbers<[1], [0], [0], [1], [0, 0, 1, 1], [], []>} : vector<1x128xf32>, vector<128x128xf32>, vector<1x128xf32> -> vector<1x128xf32>
    %80 = arith.addf %78, %79 : vector<1x128xf32>
    %81 = arith.negf %80 : vector<1x128xf32>
    %82 = math.exp %81 : vector<1x128xf32>
    %cst_26 = arith.constant 1.000000e+00 : f32
    %83 = vector.broadcast %cst_26 : f32 to vector<1x128xf32>
    %84 = arith.addf %83, %82 : vector<1x128xf32>
    %85 = arith.divf %83, %84 : vector<1x128xf32>
    %86 = math.tanh %80 : vector<1x128xf32>
    %c96_i32_27 = arith.constant 96 : i32
    %87 = tpu.dynamic_rotate %85 by %c96_i32_27 dim 1 : vector<1x128xf32>, i32 -> vector<1x128xf32>
    %c64_i32_28 = arith.constant 64 : i32
    %88 = tpu.dynamic_rotate %86 by %c64_i32_28 dim 1 : vector<1x128xf32>, i32 -> vector<1x128xf32>
    %c32_i32_29 = arith.constant 32 : i32
    %89 = tpu.dynamic_rotate %85 by %c32_i32_29 dim 1 : vector<1x128xf32>, i32 -> vector<1x128xf32>
    %90 = arith.mulf %87, %75 : vector<1x128xf32>
    %91 = arith.mulf %85, %88 : vector<1x128xf32>
    %92 = arith.addf %90, %91 : vector<1x128xf32>
    %93 = math.tanh %92 : vector<1x128xf32>
    %94 = arith.mulf %89, %93 : vector<1x128xf32>
    %95 = vector.extract_strided_slice %7 {offsets = [5, 0], sizes = [1, 128], strides = [1, 1]} : vector<8x128xf32> to vector<1x128xf32>
    %cst_30 = arith.constant dense<0.000000e+00> : vector<1x128xf32>
    %96 = tpu.matmul %94, %1, %cst_30 {dimension_numbers = #tpu.dot_dimension_numbers<[1], [0], [0], [1], [0, 0, 1, 1], [], []>} : vector<1x128xf32>, vector<128x128xf32>, vector<1x128xf32> -> vector<1x128xf32>
    %97 = arith.addf %95, %96 : vector<1x128xf32>
    %98 = arith.negf %97 : vector<1x128xf32>
    %99 = math.exp %98 : vector<1x128xf32>
    %cst_31 = arith.constant 1.000000e+00 : f32
    %100 = vector.broadcast %cst_31 : f32 to vector<1x128xf32>
    %101 = arith.addf %100, %99 : vector<1x128xf32>
    %102 = arith.divf %100, %101 : vector<1x128xf32>
    %103 = math.tanh %97 : vector<1x128xf32>
    %c96_i32_32 = arith.constant 96 : i32
    %104 = tpu.dynamic_rotate %102 by %c96_i32_32 dim 1 : vector<1x128xf32>, i32 -> vector<1x128xf32>
    %c64_i32_33 = arith.constant 64 : i32
    %105 = tpu.dynamic_rotate %103 by %c64_i32_33 dim 1 : vector<1x128xf32>, i32 -> vector<1x128xf32>
    %c32_i32_34 = arith.constant 32 : i32
    %106 = tpu.dynamic_rotate %102 by %c32_i32_34 dim 1 : vector<1x128xf32>, i32 -> vector<1x128xf32>
    %107 = arith.mulf %104, %92 : vector<1x128xf32>
    %108 = arith.mulf %102, %105 : vector<1x128xf32>
    %109 = arith.addf %107, %108 : vector<1x128xf32>
    %110 = math.tanh %109 : vector<1x128xf32>
    %111 = arith.mulf %106, %110 : vector<1x128xf32>
    %112 = vector.extract_strided_slice %7 {offsets = [6, 0], sizes = [1, 128], strides = [1, 1]} : vector<8x128xf32> to vector<1x128xf32>
    %cst_35 = arith.constant dense<0.000000e+00> : vector<1x128xf32>
    %113 = tpu.matmul %111, %1, %cst_35 {dimension_numbers = #tpu.dot_dimension_numbers<[1], [0], [0], [1], [0, 0, 1, 1], [], []>} : vector<1x128xf32>, vector<128x128xf32>, vector<1x128xf32> -> vector<1x128xf32>
    %114 = arith.addf %112, %113 : vector<1x128xf32>
    %115 = arith.negf %114 : vector<1x128xf32>
    %116 = math.exp %115 : vector<1x128xf32>
    %cst_36 = arith.constant 1.000000e+00 : f32
    %117 = vector.broadcast %cst_36 : f32 to vector<1x128xf32>
    %118 = arith.addf %117, %116 : vector<1x128xf32>
    %119 = arith.divf %117, %118 : vector<1x128xf32>
    %120 = math.tanh %114 : vector<1x128xf32>
    %c96_i32_37 = arith.constant 96 : i32
    %121 = tpu.dynamic_rotate %119 by %c96_i32_37 dim 1 : vector<1x128xf32>, i32 -> vector<1x128xf32>
    %c64_i32_38 = arith.constant 64 : i32
    %122 = tpu.dynamic_rotate %120 by %c64_i32_38 dim 1 : vector<1x128xf32>, i32 -> vector<1x128xf32>
    %c32_i32_39 = arith.constant 32 : i32
    %123 = tpu.dynamic_rotate %119 by %c32_i32_39 dim 1 : vector<1x128xf32>, i32 -> vector<1x128xf32>
    %124 = arith.mulf %121, %109 : vector<1x128xf32>
    %125 = arith.mulf %119, %122 : vector<1x128xf32>
    %126 = arith.addf %124, %125 : vector<1x128xf32>
    %127 = math.tanh %126 : vector<1x128xf32>
    %128 = arith.mulf %123, %127 : vector<1x128xf32>
    %129 = vector.extract_strided_slice %7 {offsets = [7, 0], sizes = [1, 128], strides = [1, 1]} : vector<8x128xf32> to vector<1x128xf32>
    %cst_40 = arith.constant dense<0.000000e+00> : vector<1x128xf32>
    %130 = tpu.matmul %128, %1, %cst_40 {dimension_numbers = #tpu.dot_dimension_numbers<[1], [0], [0], [1], [0, 0, 1, 1], [], []>} : vector<1x128xf32>, vector<128x128xf32>, vector<1x128xf32> -> vector<1x128xf32>
    %131 = arith.addf %129, %130 : vector<1x128xf32>
    %132 = arith.negf %131 : vector<1x128xf32>
    %133 = math.exp %132 : vector<1x128xf32>
    %cst_41 = arith.constant 1.000000e+00 : f32
    %134 = vector.broadcast %cst_41 : f32 to vector<1x128xf32>
    %135 = arith.addf %134, %133 : vector<1x128xf32>
    %136 = arith.divf %134, %135 : vector<1x128xf32>
    %137 = math.tanh %131 : vector<1x128xf32>
    %c96_i32_42 = arith.constant 96 : i32
    %138 = tpu.dynamic_rotate %136 by %c96_i32_42 dim 1 : vector<1x128xf32>, i32 -> vector<1x128xf32>
    %c64_i32_43 = arith.constant 64 : i32
    %139 = tpu.dynamic_rotate %137 by %c64_i32_43 dim 1 : vector<1x128xf32>, i32 -> vector<1x128xf32>
    %c32_i32_44 = arith.constant 32 : i32
    %140 = tpu.dynamic_rotate %136 by %c32_i32_44 dim 1 : vector<1x128xf32>, i32 -> vector<1x128xf32>
    %141 = arith.mulf %138, %126 : vector<1x128xf32>
    %142 = arith.mulf %136, %139 : vector<1x128xf32>
    %143 = arith.addf %141, %142 : vector<1x128xf32>
    %144 = math.tanh %143 : vector<1x128xf32>
    %145 = arith.mulf %140, %144 : vector<1x128xf32>
    %146 = tpu.concatenate %26, %43, %60, %77, %94, %111, %128, %145 in 0 : vector<1x128xf32>, vector<1x128xf32>, vector<1x128xf32>, vector<1x128xf32>, vector<1x128xf32>, vector<1x128xf32>, vector<1x128xf32>, vector<1x128xf32> -> vector<8x128xf32>
    %cst_45 = arith.constant dense<0.000000e+00> : vector<1x8xf32>
    %147 = tpu.matmul %3, %146, %cst_45 {dimension_numbers = #tpu.dot_dimension_numbers<[1], [1], [0], [0], [0, 0, 1, 0], [], []>} : vector<1x128xf32>, vector<8x128xf32>, vector<1x8xf32> -> vector<1x8xf32>
    %c0_46 = arith.constant 0 : index
    %c0_47 = arith.constant 0 : index
    %148 = vector.load %arg3[%c0_46, %c0_47] : memref<1x8xf32, #tpu.memory_space<vmem>>, vector<1x8xf32>
    tpu.vector_store %arg3[%c0_46, %c0_47], %147 {strides = array<i32>} : memref<1x8xf32, #tpu.memory_space<vmem>>, vector<1x8xf32>,
    return
  }
  func.func @transform_0(%arg0: i32) -> (i32, i32) {
    %c0_i32 = arith.constant 0 : i32
    %c0_i32_0 = arith.constant 0 : i32
    %c0_i32_1 = arith.constant 0 : i32
    return %c0_i32, %c0_i32_0 : i32, i32
  }
  func.func @transform_1(%arg0: i32) -> (i32, i32) {
    %c0_i32 = arith.constant 0 : i32
    %c0_i32_0 = arith.constant 0 : i32
    %c0_i32_1 = arith.constant 0 : i32
    return %c0_i32, %c0_i32_0 : i32, i32
  }
  func.func @transform_2(%arg0: i32) -> (i32, i32) {
    %c0_i32 = arith.constant 0 : i32
    %c0_i32_0 = arith.constant 0 : i32
    %c0_i32_1 = arith.constant 0 : i32
    return %c0_i32, %c0_i32_0 : i32, i32
  }
}

</mosaic_0001>

<bundles_post_ra>
// kernel: baseline_classifier_forward.1
= control target key start
LH: loop header
LB: loop body
LE: loop exit
PB: predicated region body
PF: predicated region fallthrough
CT: control target
= control target key end

     0   :  { %v1818_v0 = vmov 0.0|0.0   ;;  %vm1819_vm0 = vmmov 0   ;;  %v1820_v8 = vmov 0.0   ;;  %s1821_s20 = smov 32   ;;  %s1822_s21 = smov 96   ;;  %vm958_vm1 = vcmask 1040384   ;;  %s2159_s1 = inlined_call_operand.vmem [shape: f32[264,128], index: 1, kind: input, shape index: {}]   ;;  %s2160_s0 = inlined_call_operand.vmem [shape: f32[8,128], index: 0, kind: input, shape index: {}]   ;;  %s2161_s2 = inlined_call_operand.vmem [shape: f32[1,8], index: 2, kind: output, shape index: {}]  }
   0x1   :  { %1532 = vmatprep.subr.bf16.mxu0 %v1818_v0  ;;  %v11_v1 = vld [vmem:[%s2159_s1] sm:$0xff]  ;;  %v12_v2 = vld [vmem:[%s2159_s1 + $0x8] sm:$0xff]  ;;  %1556 = vmatprep.subr.bf16.mxu1 %v1818_v0  ;;  %v13_v6 = vld [vmem:[%s2159_s1 + $0x10] sm:$0xff]  ;;  %s1823_s22 = smov 64   ;;  %vm960_vm2 = vcmask 1041408   ;;  %vm962_vm3 = vcmask 1042432  }
   0x2   :  { %v27_v3 = vld [vmem:[%s2159_s1 + $0x80] sm:$0xff]  ;;  %v1533_v4 = vpack.c.bf16 %v12_v2, %v11_v1  ;;  %v28_v5 = vld [vmem:[%s2159_s1 + $0x88] sm:$0xff]  ;;  %v14_v7 = vld [vmem:[%s2159_s1 + $0x18] sm:$0xff]  ;;  %1244 = vmatprep.mubr.msk.f32.mxu0 %vm1819_vm0, %v1820_v8  ;;  %1279 = vmatprep.mubr.msk.f32.mxu1 %vm1819_vm0, %v1820_v8  ;;  %vm964_vm4 = vcmask 1043456   ;;  %vm966_vm5 = vcmask 1044480   ;;  %vm968_vm6 = vcmask 1045504  }
   0x3   :  { %v1863_v9 = vpack.c.bf16 %v28_v5, %v27_v3  ;;  %v29_v10 = vld [vmem:[%s2159_s1 + $0x90] sm:$0xff]  ;;  %v30_v11 = vld [vmem:[%s2159_s1 + $0x98] sm:$0xff]  ;;  %v1536_v12 = vpack.c.bf16 %v14_v7, %v13_v6  ;;  %v15_v14 = vld [vmem:[%s2159_s1 + $0x20] sm:$0xff]  ;;  %vm970_vm7 = vcmask 1046528   ;;  %vm1042_vm8 = vcmask 57344  }
   0x4   :  { %1534 = vmatpush3.bf16.msra.mxu0 %v1533_v4  ;;  %v1873_v13 = vpack.c.bf16 %v30_v11, %v29_v10  ;;  %v16_v15 = vld [vmem:[%s2159_s1 + $0x28] sm:$0xff]  ;;  %v31_v16 = vld [vmem:[%s2159_s1 + $0xa0] sm:$0xff]  ;;  %v17_v20 = vld [vmem:[%s2159_s1 + $0x30] sm:$0xff] }
   0x5   :  { %1558 = vmatpush3.bf16.msra.mxu1 %v1863_v9  ;;  %1535 = vmatprep.subr.bf16.mxu0 %v1818_v0  ;;  %v32_v17 = vld [vmem:[%s2159_s1 + $0xa8] sm:$0xff]  ;;  %v1539_v18 = vpack.c.bf16 %v16_v15, %v15_v14  ;;  %v18_v21 = vld [vmem:[%s2159_s1 + $0x38] sm:$0xff]  ;;  %v33_v22 = vld [vmem:[%s2159_s1 + $0xb0] sm:$0xff] }
   0x6   :  { %1559 = vmatprep.subr.bf16.mxu1 %v1818_v0  ;;  %v1890_v19 = vpack.c.bf16 %v32_v17, %v31_v16  ;;  %v34_v23 = vld [vmem:[%s2159_s1 + $0xb8] sm:$0xff]  ;;  %v1542_v24 = vpack.c.bf16 %v18_v21, %v17_v20  ;;  %v19_v26 = vld [vmem:[%s2159_s1 + $0x40] sm:$0xff]  ;;  %v20_v27 = vld [vmem:[%s2159_s1 + $0x48] sm:$0xff] }
   0x7   :  { %v1907_v25 = vpack.c.bf16 %v34_v23, %v33_v22  ;;  %v35_v28 = vld [vmem:[%s2159_s1 + $0xc0] sm:$0xff]  ;;  %v36_v29 = vld [vmem:[%s2159_s1 + $0xc8] sm:$0xff]  ;;  %v1545_v30 = vpack.c.bf16 %v20_v27, %v19_v26  ;;  %v21_v32 = vld [vmem:[%s2159_s1 + $0x50] sm:$0xff] }
   0x8   :  { %1537 = vmatpush3.bf16.msra.mxu0 %v1536_v12  ;;  %v1924_v31 = vpack.c.bf16 %v36_v29, %v35_v28  ;;  %v22_v33 = vld [vmem:[%s2159_s1 + $0x58] sm:$0xff]  ;;  %v37_v34 = vld [vmem:[%s2159_s1 + $0xd0] sm:$0xff]  ;;  %v23_v38 = vld [vmem:[%s2159_s1 + $0x60] sm:$0xff] }
   0x9   :  { %1561 = vmatpush3.bf16.msra.mxu1 %v1873_v13  ;;  %1538 = vmatprep.subr.bf16.mxu0 %v1818_v0  ;;  %v38_v35 = vld [vmem:[%s2159_s1 + $0xd8] sm:$0xff]  ;;  %v1548_v36 = vpack.c.bf16 %v22_v33, %v21_v32  ;;  %v24_v39 = vld [vmem:[%s2159_s1 + $0x68] sm:$0xff]  ;;  %v39_v40 = vld [vmem:[%s2159_s1 + $0xe0] sm:$0xff] }
   0xa   :  { %1562 = vmatprep.subr.bf16.mxu1 %v1818_v0  ;;  %v1941_v37 = vpack.c.bf16 %v38_v35, %v37_v34  ;;  %v40_v41 = vld [vmem:[%s2159_s1 + $0xe8] sm:$0xff]  ;;  %v1551_v42 = vpack.c.bf16 %v24_v39, %v23_v38  ;;  %v25_v44 = vld [vmem:[%s2159_s1 + $0x70] sm:$0xff]  ;;  %v26_v45 = vld [vmem:[%s2159_s1 + $0x78] sm:$0xff] }
   0xb   :  { %v1958_v43 = vpack.c.bf16 %v40_v41, %v39_v40  ;;  %v41_v46 = vld [vmem:[%s2159_s1 + $0xf0] sm:$0xff]  ;;  %v42_v47 = vld [vmem:[%s2159_s1 + $0xf8] sm:$0xff]  ;;  %v1554_v48 = vpack.c.bf16 %v26_v45, %v25_v44  ;;  %v45_v50 = vld [vmem:[%s2160_s0] sm:$0xff] }
   0xc   :  { %1540 = vmatpush3.bf16.msra.mxu0 %v1539_v18  ;;  %v1975_v49 = vpack.c.bf16 %v42_v47, %v41_v46  ;;  %v1048_v51 = vld [vmem:[%s2159_s1 + $0x100] ss:$0 sm:$0xff] }
   0xd   :  { %1564 = vmatpush3.bf16.msra.mxu1 %v1890_v19  ;;  %1541 = vmatprep.subr.bf16.mxu0 %v1818_v0 }
   0xe   :  { %1565 = vmatprep.subr.bf16.mxu1 %v1818_v0 }
  0x10   :  { %1543 = vmatpush3.bf16.msra.mxu0 %v1542_v24 }
  0x11   :  { %1567 = vmatpush3.bf16.msra.mxu1 %v1907_v25  ;;  %1544 = vmatprep.subr.bf16.mxu0 %v1818_v0 }
  0x12   :  { %1568 = vmatprep.subr.bf16.mxu1 %v1818_v0 }
  0x14   :  { %1546 = vmatpush3.bf16.msra.mxu0 %v1545_v30 }
  0x15   :  { %1570 = vmatpush3.bf16.msra.mxu1 %v1924_v31  ;;  %1547 = vmatprep.subr.bf16.mxu0 %v1818_v0 }
  0x16   :  { %1571 = vmatprep.subr.bf16.mxu1 %v1818_v0 }
  0x18   :  { %1549 = vmatpush3.bf16.msra.mxu0 %v1548_v36 }
  0x19   :  { %1573 = vmatpush3.bf16.msra.mxu1 %v1941_v37  ;;  %1550 = vmatprep.subr.bf16.mxu0 %v1818_v0 }
  0x1a   :  { %1574 = vmatprep.subr.bf16.mxu1 %v1818_v0 }
  0x1c   :  { %1552 = vmatpush3.bf16.msra.mxu0 %v1551_v42 }
  0x1d   :  { %1576 = vmatpush3.bf16.msra.mxu1 %v1958_v43  ;;  %1553 = vmatprep.subr.bf16.mxu0 %v1818_v0 }
  0x1e   :  { %1577 = vmatprep.subr.bf16.mxu1 %v1818_v0 }
  0x20   :  { %1555 = vmatpush3.bf16.msra.mxu0 %v1554_v48 }
  0x21   :  { %1579 = vmatpush3.bf16.msra.mxu1 %v1975_v49  ;;  %1580 = vmatprep.subr.bf16.mxu0 %v1818_v0 }
  0x22   :  { %1604 = vmatprep.subr.bf16.mxu1 %v1818_v0 }
  0x23   :  { %1245 = vmatmul.mubr.f32.vlgmr.msra.gmra.mrb[0].mxu0 %v45_v50 }
  0x24   :  { %1280 = vmatmul.mubr.f32.vlgmr.msra.gmra.mrb[0].mxu1 %v1820_v8  ;;  %1582 = vmatpush3.bf16.msra.mxu0 %v1863_v9 }
  0x25   :  { %1583 = vmatprep.subr.bf16.mxu0 %v1818_v0  ;;  %1314 = vmatprep.mubr.msk.f32.mxu0 %vm1819_vm0, %v1820_v8 }
  0x26   :  { %1606 = vmatpush3.bf16.msra.mxu1 %v1863_v9  ;;  %1349 = vmatprep.mubr.msk.f32.mxu1 %vm1819_vm0, %v1820_v8 }
  0x27   :  { %1607 = vmatprep.subr.bf16.mxu1 %v1818_v0 }
  0x28   :  { %1585 = vmatpush3.bf16.msra.mxu0 %v1873_v13 }
  0x29   :  { %1586 = vmatprep.subr.bf16.mxu0 %v1818_v0 }
  0x2a   :  { %1609 = vmatpush3.bf16.msra.mxu1 %v1873_v13 }
  0x2b   :  { %1610 = vmatprep.subr.bf16.mxu1 %v1818_v0 }
  0x2c   :  { %1588 = vmatpush3.bf16.msra.mxu0 %v1890_v19 }
  0x2d   :  { %1589 = vmatprep.subr.bf16.mxu0 %v1818_v0 }
  0x2e   :  { %1612 = vmatpush3.bf16.msra.mxu1 %v1890_v19 }
  0x2f   :  { %1613 = vmatprep.subr.bf16.mxu1 %v1818_v0 }
  0x30   :  { %1591 = vmatpush3.bf16.msra.mxu0 %v1907_v25 }
  0x31   :  { %1592 = vmatprep.subr.bf16.mxu0 %v1818_v0 }
  0x32   :  { %1615 = vmatpush3.bf16.msra.mxu1 %v1907_v25 }
  0x33   :  { %1616 = vmatprep.subr.bf16.mxu1 %v1818_v0 }
  0x34   :  { %1594 = vmatpush3.bf16.msra.mxu0 %v1924_v31 }
  0x35   :  { %1595 = vmatprep.subr.bf16.mxu0 %v1818_v0 }
  0x36   :  { %1618 = vmatpush3.bf16.msra.mxu1 %v1924_v31 }
  0x37   :  { %1619 = vmatprep.subr.bf16.mxu1 %v1818_v0 }
  0x38   :  { %1597 = vmatpush3.bf16.msra.mxu0 %v1941_v37 }
  0x39   :  { %1598 = vmatprep.subr.bf16.mxu0 %v1818_v0 }
  0x3a   :  { %1621 = vmatpush3.bf16.msra.mxu1 %v1941_v37 }
  0x3b   :  { %1622 = vmatprep.subr.bf16.mxu1 %v1818_v0 }
  0x3c   :  { %1600 = vmatpush3.bf16.msra.mxu0 %v1958_v43 }
  0x3d   :  { %1601 = vmatprep.subr.bf16.mxu0 %v1818_v0 }
  0x3e   :  { %1624 = vmatpush3.bf16.msra.mxu1 %v1958_v43 }
  0x3f   :  { %1625 = vmatprep.subr.bf16.mxu1 %v1818_v0 }
  0x40   :  { %1603 = vmatpush3.bf16.msra.mxu0 %v1975_v49 }
  0x41   :  { %1628 = vmatprep.subr.bf16.mxu0 %v1818_v0 }
  0x42   :  { %1627 = vmatpush3.bf16.msra.mxu1 %v1975_v49 }
  0x43   :  { %1652 = vmatprep.subr.bf16.mxu1 %v1818_v0 }
  0xf6   :  { %v116_v52 = vpop.f32.mrb[0].mxu0 }
  0xf7   :  { %v2024_v53 = vadd.f32 %v1048_v51, %v116_v52  ;;  %v1246_v54 = vpop.f32.mrb[1].mxu0  ;;  %v186_v55 = vpop.f32.mrb[0].mxu1 }
  0xf8   :  { %v1281_v56 = vpop.f32.mrb[1].mxu1 }
  0xf9   :  { %v190_v57 = vadd.f32 %v186_v55, %v2024_v53 }
  0xfb   :  { %v1049_v58 = vmul.f32 -1.442695, %v190_v57 }
  0xfd   :  { %1754 = vpow2.f32 %v1049_v58 }
 0x107   :  { %v1755_v59 = vpop.eup %1754 }
 0x108   :  { %v194_v60 = vadd.f32 1.0, %v1755_v59 }
 0x10a   :  { %1756 = vrcp.f32 %v194_v60 }
 0x10b   :  { %1758 = vtanh.f32 %v190_v57 }
 0x114   :  { %v1757_v61 = vpop.eup %1756 }
 0x115   :  { %202 = vrot.lane.b32.xlu1 %v1757_v61, %s1821_s20  ;;  %198 = vrot.lane.b32.xlu0 %v1757_v61, %s1822_s21  ;;  %v1759_v62 = vpop.eup %1758 }
 0x119   :  { %200 = vrot.lane.b32.xlu0 %v1759_v62, %s1823_s22 }
 0x187   :  { %v199_v63 = vpop.permute.xlu0 %198  ;;  %v203_v6 = vpop.permute.xlu1 %202 }
 0x188   :  { %v204_v2 = vmul.f32 0.0, %v199_v63 }
 0x18b   :  { %v201_v1 = vpop.permute.xlu0 %200 }
 0x18c   :  { %v205_v3 = vmul.f32 %v1757_v61, %v201_v1 }
 0x18e   :  { %v206_v4 = vadd.f32 %v205_v3, %v204_v2 }
 0x190   :  { %1760 = vtanh.f32 %v206_v4 }
 0x19a   :  { %v1761_v5 = vpop.eup %1760 }
 0x19b   :  { %v2030_v7 = vmul.f32 %v1761_v5, %v203_v6 }
 0x19d   :  { %1315 = vmatmul.mubr.f32.vlgmr.msra.gmra.mrb[2].mxu0 %v2030_v7 }
 0x19e   :  { %1630 = vmatpush3.bf16.msra.mxu0 %v1863_v9  ;;  %1384 = vmatprep.mubr.msk.f32.mxu0 %vm1819_vm0, %v1820_v8 }
 0x19f   :  { %1631 = vmatprep.subr.bf16.mxu0 %v1818_v0 }
 0x1a2   :  { %1633 = vmatpush3.bf16.msra.mxu0 %v1873_v13 }
 0x1a3   :  { %1634 = vmatprep.subr.bf16.mxu0 %v1818_v0 }
 0x1a6   :  { %1636 = vmatpush3.bf16.msra.mxu0 %v1890_v19 }
 0x1a7   :  { %1637 = vmatprep.subr.bf16.mxu0 %v1818_v0 }
 0x1aa   :  { %1639 = vmatpush3.bf16.msra.mxu0 %v1907_v25 }
 0x1ab   :  { %1640 = vmatprep.subr.bf16.mxu0 %v1818_v0 }
 0x1ae   :  { %1642 = vmatpush3.bf16.msra.mxu0 %v1924_v31 }
 0x1af   :  { %1643 = vmatprep.subr.bf16.mxu0 %v1818_v0 }
 0x1b2   :  { %1645 = vmatpush3.bf16.msra.mxu0 %v1941_v37 }
 0x1b3   :  { %1646 = vmatprep.subr.bf16.mxu0 %v1818_v0 }
 0x1b6   :  { %1648 = vmatpush3.bf16.msra.mxu0 %v1958_v43 }
 0x1b7   :  { %1649 = vmatprep.subr.bf16.mxu0 %v1818_v0 }
 0x1ba   :  { %1651 = vmatpush3.bf16.msra.mxu0 %v1975_v49 }
 0x1bb   :  { %1676 = vmatprep.subr.bf16.mxu0 %v1818_v0 }
 0x270   :  { %v275_v10 = vpop.f32.mrb[2].mxu0 }
 0x271   :  { %v280_v11 = vrot.slane %v275_v10, 7  ;;  %v1316_v12 = vpop.f32.mrb[3].mxu0 }
 0x273   :  { %v282_v14 = vadd.f32 %v280_v11, %v2024_v53 }
 0x275   :  { %v1050_v15 = vmul.f32 -1.442695, %v282_v14  ;;  %1762 = vtanh.f32 %v282_v14 }
 0x277   :  { %1764 = vpow2.f32 %v1050_v15 }
 0x27f   :  { %v1763_v16 = vpop.eup %1762 }
 0x280   :  { %v296_v17 = vrot.slane %v1763_v16, 1 }
 0x281   :  { %v1765_v18 = vpop.eup %1764 }
 0x282   :  { %v286_v20 = vadd.f32 1.0, %v1765_v18  ;;  %298 = vrot.lane.b32.xlu1 %v296_v17, %s1823_s22 }
 0x284   :  { %1766 = vrcp.f32 %v286_v20 }
 0x28e   :  { %v1767_v21 = vpop.eup %1766 }
 0x28f   :  { %v291_v22 = vrot.slane %v1767_v21, 1 }
 0x291   :  { %300 = vrot.lane.b32.xlu1 %v291_v22, %s1821_s20  ;;  %293 = vrot.lane.b32.xlu0 %v291_v22, %s1822_s21 }
 0x2f4   :  { %v299_v23 = vpop.permute.xlu1 %298 }
 0x2f5   :  { %v304_v24 = vrot.slane %v299_v23, 7 }
 0x2f7   :  { %v306_v26 = vmul.f32 %v1767_v21, %v304_v24 }
 0x2f9   :  { %v308_v28 = vrot.slane %v306_v26, 1 }
 0x303   :  { %v294_v27 = vpop.permute.xlu0 %293  ;;  %v301_v33 = vpop.permute.xlu1 %300 }
 0x304   :  { %v302_v29 = vmul.f32 %v294_v27, %v206_v4 }
 0x306   :  { %v310_v30 = vadd.f32 %v308_v28, %v302_v29 }
 0x308   :  { %1768 = vtanh.f32 %v310_v30 }
 0x312   :  { %v1769_v32 = vpop.eup %1768 }
 0x313   :  { %v312_v34 = vmul.f32 %v1769_v32, %v301_v33 }
 0x315   :  { %1350 = vmatmul.mubr.f32.vlgmr.msra.gmra.mrb[2].mxu1 %v312_v34  ;;  %v938_v58 = vrot.slane %v312_v34, 7 }
 0x316   :  { %1654 = vmatpush3.bf16.msra.mxu1 %v1863_v9  ;;  %1419 = vmatprep.mubr.msk.f32.mxu1 %vm1819_vm0, %v1820_v8 }
 0x317   :  { %1655 = vmatprep.subr.bf16.mxu1 %v1818_v0  ;;  %v959_v62 = vsel %vm958_vm1, %v2030_v7, %v938_v58 }
 0x31a   :  { %1657 = vmatpush3.bf16.msra.mxu1 %v1873_v13 }
 0x31b   :  { %1658 = vmatprep.subr.bf16.mxu1 %v1818_v0 }
 0x31e   :  { %1660 = vmatpush3.bf16.msra.mxu1 %v1890_v19 }
 0x31f   :  { %1661 = vmatprep.subr.bf16.mxu1 %v1818_v0 }
 0x322   :  { %1663 = vmatpush3.bf16.msra.mxu1 %v1907_v25 }
 0x323   :  { %1664 = vmatprep.subr.bf16.mxu1 %v1818_v0 }
 0x326   :  { %1666 = vmatpush3.bf16.msra.mxu1 %v1924_v31 }
 0x327   :  { %1667 = vmatprep.subr.bf16.mxu1 %v1818_v0 }
 0x32a   :  { %1669 = vmatpush3.bf16.msra.mxu1 %v1941_v37 }
 0x32b   :  { %1670 = vmatprep.subr.bf16.mxu1 %v1818_v0 }
 0x32e   :  { %1672 = vmatpush3.bf16.msra.mxu1 %v1958_v43 }
 0x32f   :  { %1673 = vmatprep.subr.bf16.mxu1 %v1818_v0 }
 0x332   :  { %1675 = vmatpush3.bf16.msra.mxu1 %v1975_v49 }
 0x333   :  { %1700 = vmatprep.subr.bf16.mxu1 %v1818_v0 }
 0x3e8   :  { %v379_v35 = vpop.f32.mrb[2].mxu1 }
 0x3e9   :  { %v384_v36 = vrot.slane %v379_v35, 6  ;;  %v1351_v38 = vpop.f32.mrb[3].mxu1 }
 0x3eb   :  { %v386_v39 = vadd.f32 %v384_v36, %v2024_v53 }
 0x3ed   :  { %v1051_v40 = vmul.f32 -1.442695, %v386_v39  ;;  %1770 = vtanh.f32 %v386_v39 }
 0x3ef   :  { %1772 = vpow2.f32 %v1051_v40 }
 0x3f7   :  { %v1771_v41 = vpop.eup %1770 }
 0x3f8   :  { %v400_v42 = vrot.slane %v1771_v41, 2 }
 0x3f9   :  { %v1773_v44 = vpop.eup %1772 }
 0x3fa   :  { %v390_v45 = vadd.f32 1.0, %v1773_v44  ;;  %402 = vrot.lane.b32.xlu0 %v400_v42, %s1823_s22 }
 0x3fc   :  { %1774 = vrcp.f32 %v390_v45 }
 0x406   :  { %v1775_v46 = vpop.eup %1774 }
 0x407   :  { %v395_v47 = vrot.slane %v1775_v46, 2 }
 0x409   :  { %404 = vrot.lane.b32.xlu0 %v395_v47, %s1821_s20  ;;  %397 = vrot.lane.b32.xlu1 %v395_v47, %s1822_s21 }
 0x46c   :  { %v403_v48 = vpop.permute.xlu0 %402 }
 0x46d   :  { %v408_v50 = vrot.slane %v403_v48, 6 }
 0x46f   :  { %v410_v51 = vmul.f32 %v1775_v46, %v408_v50 }
 0x471   :  { %v412_v54 = vrot.slane %v410_v51, 2 }
 0x47b   :  { %v398_v52 = vpop.permute.xlu1 %397  ;;  %v405_v59 = vpop.permute.xlu0 %404 }
 0x47c   :  { %v406_v55 = vmul.f32 %v398_v52, %v310_v30 }
 0x47e   :  { %v414_v56 = vadd.f32 %v412_v54, %v406_v55 }
 0x480   :  { %1776 = vtanh.f32 %v414_v56 }
 0x48a   :  { %v1777_v57 = vpop.eup %1776 }
 0x48b   :  { %v416_v60 = vmul.f32 %v1777_v57, %v405_v59 }
 0x48d   :  { %1385 = vmatmul.mubr.f32.vlgmr.msra.gmra.mrb[4].mxu0 %v416_v60  ;;  %v941_v61 = vrot.slane %v416_v60, 6 }
 0x48e   :  { %1678 = vmatpush3.bf16.msra.mxu0 %v1863_v9  ;;  %1454 = vmatprep.mubr.msk.f32.mxu0 %vm1819_vm0, %v1820_v8 }
 0x48f   :  { %v961_v63 = vsel %vm960_vm2, %v959_v62, %v941_v61  ;;  %1679 = vmatprep.subr.bf16.mxu0 %v1818_v0 }
 0x492   :  { %1681 = vmatpush3.bf16.msra.mxu0 %v1873_v13 }
 0x493   :  { %1682 = vmatprep.subr.bf16.mxu0 %v1818_v0 }
 0x496   :  { %1684 = vmatpush3.bf16.msra.mxu0 %v1890_v19 }
 0x497   :  { %1685 = vmatprep.subr.bf16.mxu0 %v1818_v0 }
 0x49a   :  { %1687 = vmatpush3.bf16.msra.mxu0 %v1907_v25 }
 0x49b   :  { %1688 = vmatprep.subr.bf16.mxu0 %v1818_v0 }
 0x49e   :  { %1690 = vmatpush3.bf16.msra.mxu0 %v1924_v31 }
 0x49f   :  { %1691 = vmatprep.subr.bf16.mxu0 %v1818_v0 }
 0x4a2   :  { %1693 = vmatpush3.bf16.msra.mxu0 %v1941_v37 }
 0x4a3   :  { %1694 = vmatprep.subr.bf16.mxu0 %v1818_v0 }
 0x4a6   :  { %1696 = vmatpush3.bf16.msra.mxu0 %v1958_v43 }
 0x4a7   :  { %1697 = vmatprep.subr.bf16.mxu0 %v1818_v0 }
 0x4aa   :  { %1699 = vmatpush3.bf16.msra.mxu0 %v1975_v49 }
 0x4ab   :  { %1724 = vmatprep.subr.bf16.mxu0 %v1818_v0 }
 0x560   :  { %v483_v1 = vpop.f32.mrb[4].mxu0 }
 0x561   :  { %v488_v2 = vrot.slane %v483_v1, 5  ;;  %v1386_v3 = vpop.f32.mrb[5].mxu0 }
 0x563   :  { %v490_v4 = vadd.f32 %v488_v2, %v2024_v53 }
 0x565   :  { %v1052_v5 = vmul.f32 -1.442695, %v490_v4  ;;  %1778 = vtanh.f32 %v490_v4 }
 0x567   :  { %1780 = vpow2.f32 %v1052_v5 }
 0x56f   :  { %v1779_v6 = vpop.eup %1778 }
 0x570   :  { %v504_v7 = vrot.slane %v1779_v6, 3 }
 0x571   :  { %v1781_v10 = vpop.eup %1780 }
 0x572   :  { %v494_v11 = vadd.f32 1.0, %v1781_v10  ;;  %506 = vrot.lane.b32.xlu1 %v504_v7, %s1823_s22 }
 0x574   :  { %1782 = vrcp.f32 %v494_v11 }
 0x57e   :  { %v1783_v12 = vpop.eup %1782 }
 0x57f   :  { %v499_v14 = vrot.slane %v1783_v12, 3 }
 0x581   :  { %508 = vrot.lane.b32.xlu1 %v499_v14, %s1821_s20  ;;  %501 = vrot.lane.b32.xlu0 %v499_v14, %s1822_s21 }
 0x5e4   :  { %v507_v15 = vpop.permute.xlu1 %506 }
 0x5e5   :  { %v512_v16 = vrot.slane %v507_v15, 5 }
 0x5e7   :  { %v514_v17 = vmul.f32 %v1783_v12, %v512_v16 }
 0x5e9   :  { %v516_v20 = vrot.slane %v514_v17, 3 }
 0x5f3   :  { %v502_v18 = vpop.permute.xlu0 %501  ;;  %v509_v24 = vpop.permute.xlu1 %508 }
 0x5f4   :  { %v510_v21 = vmul.f32 %v502_v18, %v414_v56 }
 0x5f6   :  { %v518_v22 = vadd.f32 %v516_v20, %v510_v21 }
 0x5f8   :  { %1784 = vtanh.f32 %v518_v22 }
 0x602   :  { %v1785_v23 = vpop.eup %1784 }
 0x603   :  { %v520_v26 = vmul.f32 %v1785_v23, %v509_v24 }
 0x605   :  { %1420 = vmatmul.mubr.f32.vlgmr.msra.gmra.mrb[4].mxu1 %v520_v26  ;;  %v944_v27 = vrot.slane %v520_v26, 5 }
 0x606   :  { %1702 = vmatpush3.bf16.msra.mxu1 %v1863_v9  ;;  %1489 = vmatprep.mubr.msk.f32.mxu1 %vm1819_vm0, %v1820_v8 }
 0x607   :  { %1703 = vmatprep.subr.bf16.mxu1 %v1818_v0  ;;  %v963_v28 = vsel %vm962_vm3, %v961_v63, %v944_v27 }
 0x60a   :  { %1705 = vmatpush3.bf16.msra.mxu1 %v1873_v13 }
 0x60b   :  { %1706 = vmatprep.subr.bf16.mxu1 %v1818_v0 }
 0x60e   :  { %1708 = vmatpush3.bf16.msra.mxu1 %v1890_v19 }
 0x60f   :  { %1709 = vmatprep.subr.bf16.mxu1 %v1818_v0 }
 0x612   :  { %1711 = vmatpush3.bf16.msra.mxu1 %v1907_v25 }
 0x613   :  { %1712 = vmatprep.subr.bf16.mxu1 %v1818_v0 }
 0x616   :  { %1714 = vmatpush3.bf16.msra.mxu1 %v1924_v31 }
 0x617   :  { %1715 = vmatprep.subr.bf16.mxu1 %v1818_v0 }
 0x61a   :  { %1717 = vmatpush3.bf16.msra.mxu1 %v1941_v37 }
 0x61b   :  { %1718 = vmatprep.subr.bf16.mxu1 %v1818_v0 }
 0x61e   :  { %1720 = vmatpush3.bf16.msra.mxu1 %v1958_v43 }
 0x61f   :  { %1721 = vmatprep.subr.bf16.mxu1 %v1818_v0 }
 0x622   :  { %1723 = vmatpush3.bf16.msra.mxu1 %v1975_v49 }
 0x623   :  { %1527 = vmatprep.subr.mxu1 %v1820_v8 }
 0x6d8   :  { %v587_v29 = vpop.f32.mrb[4].mxu1 }
 0x6d9   :  { %v592_v30 = vrot.slane %v587_v29, 4  ;;  %v1421_v32 = vpop.f32.mrb[5].mxu1 }
 0x6db   :  { %v594_v33 = vadd.f32 %v592_v30, %v2024_v53 }
 0x6dd   :  { %v1053_v34 = vmul.f32 -1.442695, %v594_v33  ;;  %1786 = vtanh.f32 %v594_v33 }
 0x6df   :  { %1788 = vpow2.f32 %v1053_v34 }
 0x6e7   :  { %v1787_v35 = vpop.eup %1786 }
 0x6e8   :  { %v608_v36 = vrot.slane %v1787_v35, 4 }
 0x6e9   :  { %v1789_v38 = vpop.eup %1788 }
 0x6ea   :  { %v598_v39 = vadd.f32 1.0, %v1789_v38  ;;  %610 = vrot.lane.b32.xlu0 %v608_v36, %s1823_s22 }
 0x6ec   :  { %1790 = vrcp.f32 %v598_v39 }
 0x6f6   :  { %v1791_v40 = vpop.eup %1790 }
 0x6f7   :  { %v603_v41 = vrot.slane %v1791_v40, 4 }
 0x6f9   :  { %612 = vrot.lane.b32.xlu0 %v603_v41, %s1821_s20  ;;  %605 = vrot.lane.b32.xlu1 %v603_v41, %s1822_s21 }
 0x75c   :  { %v611_v42 = vpop.permute.xlu0 %610 }
 0x75d   :  { %v616_v44 = vrot.slane %v611_v42, 4 }
 0x75f   :  { %v618_v45 = vmul.f32 %v1791_v40, %v616_v44 }
 0x761   :  { %v620_v47 = vrot.slane %v618_v45, 4 }
 0x76b   :  { %v606_v46 = vpop.permute.xlu1 %605  ;;  %v613_v52 = vpop.permute.xlu0 %612 }
 0x76c   :  { %v614_v48 = vmul.f32 %v606_v46, %v518_v22 }
 0x76e   :  { %v622_v50 = vadd.f32 %v620_v47, %v614_v48 }
 0x770   :  { %1792 = vtanh.f32 %v622_v50 }
 0x77a   :  { %v1793_v51 = vpop.eup %1792 }
 0x77b   :  { %v624_v54 = vmul.f32 %v1793_v51, %v613_v52 }
 0x77d   :  { %1455 = vmatmul.mubr.f32.vlgmr.msra.gmra.mrb[6].mxu0 %v624_v54  ;;  %v947_v55 = vrot.slane %v624_v54, 4 }
 0x77e   :  { %1726 = vmatpush3.bf16.msra.mxu0 %v1863_v9  ;;  %1524 = vmatprep.mubr.msk.f32.mxu0 %vm1819_vm0, %v1820_v8 }
 0x77f   :  { %1727 = vmatprep.subr.bf16.mxu0 %v1818_v0  ;;  %v965_v56 = vsel %vm964_vm4, %v963_v28, %v947_v55 }
 0x782   :  { %1729 = vmatpush3.bf16.msra.mxu0 %v1873_v13 }
 0x783   :  { %1730 = vmatprep.subr.bf16.mxu0 %v1818_v0 }
 0x786   :  { %1732 = vmatpush3.bf16.msra.mxu0 %v1890_v19 }
 0x787   :  { %1733 = vmatprep.subr.bf16.mxu0 %v1818_v0 }
 0x78a   :  { %1735 = vmatpush3.bf16.msra.mxu0 %v1907_v25 }
 0x78b   :  { %1736 = vmatprep.subr.bf16.mxu0 %v1818_v0 }
 0x78e   :  { %1738 = vmatpush3.bf16.msra.mxu0 %v1924_v31 }
 0x78f   :  { %1739 = vmatprep.subr.bf16.mxu0 %v1818_v0 }
 0x792   :  { %1741 = vmatpush3.bf16.msra.mxu0 %v1941_v37 }
 0x793   :  { %1742 = vmatprep.subr.bf16.mxu0 %v1818_v0 }
 0x796   :  { %1744 = vmatpush3.bf16.msra.mxu0 %v1958_v43 }
 0x797   :  { %1745 = vmatprep.subr.bf16.mxu0 %v1818_v0 }
 0x79a   :  { %1747 = vmatpush3.bf16.msra.mxu0 %v1975_v49 }
 0x850   :  { %v691_v9 = vpop.f32.mrb[6].mxu0 }
 0x851   :  { %v696_v13 = vrot.slane %v691_v9, 3  ;;  %v1456_v19 = vpop.f32.mrb[7].mxu0 }
 0x853   :  { %v698_v25 = vadd.f32 %v696_v13, %v2024_v53 }
 0x855   :  { %v1054_v57 = vmul.f32 -1.442695, %v698_v25  ;;  %1794 = vtanh.f32 %v698_v25 }
 0x857   :  { %1796 = vpow2.f32 %v1054_v57 }
 0x85f   :  { %v1795_v31 = vpop.eup %1794 }
 0x860   :  { %v712_v58 = vrot.slane %v1795_v31, 5  ;;  %v44_v31 = vld [vmem:[%s2159_s1 + $0x101] sm:$0x1] }
 0x861   :  { %v1797_v59 = vpop.eup %1796 }
 0x862   :  { %v702_v37 = vadd.f32 1.0, %v1797_v59  ;;  %714 = vrot.lane.b32.xlu1 %v712_v58, %s1823_s22 }
 0x864   :  { %1798 = vrcp.f32 %v702_v37 }
 0x86e   :  { %v1799_v43 = vpop.eup %1798 }
 0x86f   :  { %v707_v60 = vrot.slane %v1799_v43, 5 }
 0x871   :  { %716 = vrot.lane.b32.xlu1 %v707_v60, %s1821_s20  ;;  %709 = vrot.lane.b32.xlu0 %v707_v60, %s1822_s21 }
 0x8d4   :  { %v715_v0 = vpop.permute.xlu1 %714 }
 0x8d5   :  { %v720_v49 = vrot.slane %v715_v0, 3 }
 0x8d7   :  { %v722_v61 = vmul.f32 %v1799_v43, %v720_v49 }
 0x8d9   :  { %v724_v63 = vrot.slane %v722_v61, 5 }
 0x8e3   :  { %v710_v62 = vpop.permute.xlu0 %709  ;;  %v717_v4 = vpop.permute.xlu1 %716 }
 0x8e4   :  { %v718_v1 = vmul.f32 %v710_v62, %v622_v50 }
 0x8e6   :  { %v726_v2 = vadd.f32 %v724_v63, %v718_v1 }
 0x8e8   :  { %1800 = vtanh.f32 %v726_v2 }
 0x8f2   :  { %v1801_v3 = vpop.eup %1800 }
 0x8f3   :  { %v728_v5 = vmul.f32 %v1801_v3, %v717_v4 }
 0x8f5   :  { %1490 = vmatmul.mubr.f32.vlgmr.msra.gmra.mrb[6].mxu1 %v728_v5  ;;  %v950_v6 = vrot.slane %v728_v5, 3 }
 0x8f6   :  { %1529 = vmatprep.mubr.msk.f32.mxu1 %vm1819_vm0, %v1820_v8 }
 0x8f7   :  { %v967_v7 = vsel %vm966_vm5, %v965_v56, %v950_v6 }
 0x9c8   :  { %v795_v10 = vpop.f32.mrb[6].mxu1 }
 0x9c9   :  { %v800_v11 = vrot.slane %v795_v10, 2  ;;  %v1491_v12 = vpop.f32.mrb[7].mxu1 }
 0x9cb   :  { %v802_v14 = vadd.f32 %v800_v11, %v2024_v53 }
 0x9cd   :  { %v1055_v15 = vmul.f32 -1.442695, %v802_v14  ;;  %1802 = vtanh.f32 %v802_v14 }
 0x9cf   :  { %1804 = vpow2.f32 %v1055_v15 }
 0x9d7   :  { %v1803_v16 = vpop.eup %1802 }
 0x9d8   :  { %v816_v17 = vrot.slane %v1803_v16, 6 }
 0x9d9   :  { %v1805_v18 = vpop.eup %1804 }
 0x9da   :  { %v806_v20 = vadd.f32 1.0, %v1805_v18  ;;  %818 = vrot.lane.b32.xlu0 %v816_v17, %s1823_s22 }
 0x9dc   :  { %1806 = vrcp.f32 %v806_v20 }
 0x9e6   :  { %v1807_v21 = vpop.eup %1806 }
 0x9e7   :  { %v811_v22 = vrot.slane %v1807_v21, 6 }
 0x9e9   :  { %820 = vrot.lane.b32.xlu0 %v811_v22, %s1821_s20  ;;  %813 = vrot.lane.b32.xlu1 %v811_v22, %s1822_s21 }
 0xa4c   :  { %v819_v8 = vpop.permute.xlu0 %818 }
 0xa4d   :  { %v824_v23 = vrot.slane %v819_v8, 2 }
 0xa4f   :  { %v826_v24 = vmul.f32 %v1807_v21, %v824_v23 }
 0xa51   :  { %v828_v27 = vrot.slane %v826_v24, 6 }
 0xa5b   :  { %v814_v26 = vpop.permute.xlu1 %813  ;;  %v821_v32 = vpop.permute.xlu0 %820 }
 0xa5c   :  { %v822_v28 = vmul.f32 %v814_v26, %v726_v2 }
 0xa5e   :  { %v830_v29 = vadd.f32 %v828_v27, %v822_v28 }
 0xa60   :  { %1808 = vtanh.f32 %v830_v29 }
 0xa6a   :  { %v1809_v30 = vpop.eup %1808 }
 0xa6b   :  { %v832_v33 = vmul.f32 %v1809_v30, %v821_v32 }
 0xa6d   :  { %1525 = vmatmul.mubr.f32.vlgmr.msra.gmra.mrb[8].mxu0 %v832_v33  ;;  %v953_v34 = vrot.slane %v832_v33, 2 }
 0xa6f   :  { %v969_v35 = vsel %vm968_vm6, %v967_v7, %v953_v34 }
 0xb40   :  { %v899_v36 = vpop.f32.mrb[8].mxu0 }
 0xb41   :  { %v904_v38 = vrot.slane %v899_v36, 1  ;;  %v1526_v39 = vpop.f32.mrb[9].mxu0 }
 0xb43   :  { %v906_v40 = vadd.f32 %v904_v38, %v2024_v53 }
 0xb45   :  { %v1056_v41 = vmul.f32 -1.442695, %v906_v40  ;;  %1810 = vtanh.f32 %v906_v40 }
 0xb47   :  { %1812 = vpow2.f32 %v1056_v41 }
 0xb4f   :  { %v1811_v42 = vpop.eup %1810 }
 0xb50   :  { %v920_v44 = vrot.slane %v1811_v42, 7 }
 0xb51   :  { %v1813_v45 = vpop.eup %1812 }
 0xb52   :  { %v910_v46 = vadd.f32 1.0, %v1813_v45  ;;  %922 = vrot.lane.b32.xlu1 %v920_v44, %s1823_s22 }
 0xb54   :  { %1814 = vrcp.f32 %v910_v46 }
 0xb5e   :  { %v1815_v47 = vpop.eup %1814 }
 0xb5f   :  { %v915_v48 = vrot.slane %v1815_v47, 7 }
 0xb61   :  { %924 = vrot.lane.b32.xlu1 %v915_v48, %s1821_s20  ;;  %917 = vrot.lane.b32.xlu0 %v915_v48, %s1822_s21 }
 0xbc4   :  { %v923_v50 = vpop.permute.xlu1 %922 }
 0xbc5   :  { %v928_v51 = vrot.slane %v923_v50, 1 }
 0xbc7   :  { %v930_v52 = vmul.f32 %v1815_v47, %v928_v51 }
 0xbc9   :  { %v932_v54 = vrot.slane %v930_v52, 7 }
 0xbd3   :  { %v918_v53 = vpop.permute.xlu0 %917  ;;  %v925_v13 = vpop.permute.xlu1 %924 }
 0xbd4   :  { %v926_v55 = vmul.f32 %v918_v53, %v830_v29 }
 0xbd6   :  { %v934_v56 = vadd.f32 %v932_v54, %v926_v55 }
 0xbd8   :  { %1816 = vtanh.f32 %v934_v56 }
 0xbe2   :  { %v1817_v9 = vpop.eup %1816 }
 0xbe3   :  { %v936_v19 = vmul.f32 %v1817_v9, %v925_v13 }
 0xbe5   :  { %v956_v25 = vrot.slane %v936_v19, 1 }
 0xbe7   :  { %v971_v57 = vsel %vm970_vm7, %v969_v35, %v956_v25 }
 0xbe8   :  { %1528 = vmatpush3.xpose.msra.mxu1 %v971_v57 }
 0xbeb   :  { %1530 = vmatmul.mubr.f32.vlgmr.msra.gmra.mrb[8].mxu1 %v44_v31 }
 0xcbe   :  { %v1038_v58 = vpop.f32.mrb[8].mxu1 }
 0xcbf   :  { %1043 = vst.msk [vmem:[%s2161_s2] sm:$0x1] %vm1042_vm8, %v1038_v58  ;;  %v1531_v59 = vpop.f32.mrb[9].mxu1 }

</bundles_post_ra>
